<compile_context>
chip_gen: v6e
topology: v6e:2x2x1
jax: 0.10.0
libtpu: 0.0.40
codegen_flags: <defaults>
</compile_context>

<pallas_src>
import math
import functools

import jax
import jax.numpy as jnp
from jax.experimental import pallas as pl
from jax.experimental.pallas import tpu as pltpu


MODEL_DIM = 32
LANES = 128
DEFAULT_TILE_ROWS = 4096    # packed rows per grid step (4096*128*4B = 2 MiB f32 out tile)
_MIN_TILES = 4              # keep >=4 tiles on big slabs so v7x's 2 TCs stay balanced


def _round_up(v, m):
    return ((v + m - 1) // m) * m


def _gelu_tanh(x):
    # TODO(synk): SinusoidalMLPPositionalEmbedding's activation is not given in the
    # spec; using tanh-approx GELU (swap in the erf form if the module uses nn.GELU()).
    c = 0.7978845608028654  # sqrt(2/pi)
    return 0.5 * x * (1.0 + jnp.tanh(c * (x + 0.044715 * x * x * x)))


# ----------------------------------------------------------------------------- kernel

def _head_kernel(x_ref, f_ref, w1_ref, b1_ref, w2_ref, b2_ref, o_ref):
    # x_ref : [T, K]   packed positions (4 per row) + ones column (carries cos offset)
    #                  + zero padding columns to K=8
    # f_ref : [K, DP]  block frequency expander with the pi/2 cos offset folded in
    # w*    : [DP, DP] block-diagonal MLP weights (f32 or bf16)
    # b*    : [1, DP]  f32 biases
    arg = jnp.dot(x_ref[...], f_ref[...], preferred_element_type=jnp.float32)
    emb = jnp.sin(arg)                                 # single pass == [sin | cos]
    h = jnp.dot(emb.astype(w1_ref.dtype), w1_ref[...],
                preferred_element_type=jnp.float32) + b1_ref[...]
    h = _gelu_tanh(h)
    out = jnp.dot(h.astype(w2_ref.dtype), w2_ref[...],
                  preferred_element_type=jnp.float32) + b2_ref[...]
    o_ref[...] = out.astype(o_ref.dtype)


# ----------------------------------------------------------------------------- wrapper

def _block_diag(w, pack):
    d = w.shape[0]
    eye = jnp.eye(pack, dtype=w.dtype)
    return jnp.einsum("pq,ab->paqb", eye, w).reshape(pack * d, pack * d)


def _freq_expander(model_dim, pack, k_dim):
    half = model_dim // 2
    scale = math.log(10000.0) / (half - 1)
    freqs = jnp.exp(-scale * jnp.arange(half, dtype=jnp.float32))
    freqs_full = jnp.concatenate([freqs, freqs])                            # [D]
    off = jnp.concatenate([jnp.zeros((half,), jnp.float32),
                           jnp.full((half,), 0.5 * math.pi, jnp.float32)])  # [D]
    dp = pack * model_dim
    f = jnp.einsum("pq,d->pqd", jnp.eye(pack, dtype=jnp.float32),
                   freqs_full).reshape(pack, dp)                            # [PACK, DP]
    off_row = jnp.tile(off, pack).reshape(1, dp)                            # [1, DP]
    zeros = jnp.zeros((k_dim - pack - 1, dp), jnp.float32)
    return jnp.concatenate([f, off_row, zeros], axis=0)                     # [K, DP]


def prepare_wavelengthphase_embedding_params(params, model_dim=MODEL_DIM,
                                             matmul_dtype=jnp.float32):
    """Hoisted out of the per-call path: expand each head's weights to block-diagonal
    [128,128] form, tile biases, and build the frequency expander exactly once.
    NOTE: if importing real PyTorch nn.Linear weights, transpose them first
    ([out,in] -> [in,out]); this code expects [in, out]."""
    pack = max(1, LANES // model_dim)
    k_dim = _round_up(pack + 1, 8)

    def expand(p):
        w1, b1, w2, b2 = p
        return {
            "w1": _block_diag(w1, pack).astype(matmul_dtype),
            "b1": jnp.tile(b1.reshape(1, model_dim), (1, pack)).astype(jnp.float32),
            "w2": _block_diag(w2, pack).astype(matmul_dtype),
            "b2": jnp.tile(b2.reshape(1, model_dim), (1, pack)).astype(jnp.float32),
        }

    return {
        "wavelength": expand(params["wavelength"]),
        "phase": expand(params["phase"]),
        "freq_expander": _freq_expander(model_dim, pack, k_dim),
    }


def _run_head(x_flat, head, f_expand, model_dim, out_dtype, max_tile_rows):
    pack = max(1, LANES // model_dim)
    dp = pack * model_dim
    k_dim = f_expand.shape[0]

    n = x_flat.shape[0]
    rows = -(-max(n, 1) // pack)
    rows8 = _round_up(rows, 8)
    tile_rows = min(max_tile_rows, rows8)
    if rows8 >= _MIN_TILES * 512:                 # only split big slabs (v7x balance)
        tile_rows = min(tile_rows, _round_up(-(-rows8 // _MIN_TILES), 8))
    rows_pad = _round_up(rows8, tile_rows)
    n_tiles = rows_pad // tile_rows

    x = jnp.pad(x_flat.astype(jnp.float32), (0, rows_pad * pack - n))
    x = x.reshape(rows_pad, pack)
    x = jnp.concatenate(
        [x,
         jnp.ones((rows_pad, 1), jnp.float32),                  # carries the cos offset
         jnp.zeros((rows_pad, k_dim - pack - 1), jnp.float32)], # pad K to 8
        axis=-1)                                                # [rows_pad, K]

    out = pl.pallas_call(
        _head_kernel,
        out_shape=jax.ShapeDtypeStruct((rows_pad, dp), out_dtype),
        grid_spec=pltpu.PrefetchScalarGridSpec(
            num_scalar_prefetch=0,
            grid=(n_tiles,),
            in_specs=[
                pl.BlockSpec((tile_rows, k_dim), lambda i: (i, 0)),
                pl.BlockSpec((k_dim, dp), lambda i: (0, 0)),
                pl.BlockSpec((dp, dp), lambda i: (0, 0)),
                pl.BlockSpec((1, dp), lambda i: (0, 0)),
                pl.BlockSpec((dp, dp), lambda i: (0, 0)),
                pl.BlockSpec((1, dp), lambda i: (0, 0)),
            ],
            out_specs=pl.BlockSpec((tile_rows, dp), lambda i: (i, 0)),
        ),
        compiler_params=pltpu.CompilerParams(
            dimension_semantics=("parallel",),      # independent tiles -> 2 TCs on v7x
            vmem_limit_bytes=32 * 1024 * 1024),     # safe on v7x's 64 MiB VMEM
    )(x, f_expand, head["w1"], head["b1"], head["w2"], head["b2"])

    return out.reshape(rows_pad * pack, model_dim)[:n]


@functools.partial(jax.jit, static_argnames=("model_dim", "out_dtype", "max_tile_rows"))
def wavelengthphase_embedding(prepared, wavelength, phase, model_dim=MODEL_DIM,
                              out_dtype=jnp.float32,
                              max_tile_rows=DEFAULT_TILE_ROWS):
    """
    Args:
      prepared:   output of prepare_wavelengthphase_embedding_params
      wavelength: [batch, len]
      phase:      [batch]
    Returns:
      (wavelength_emb [batch, len, model_dim], phase_emb [batch, 1, model_dim])
    """
    b, l = wavelength.shape
    f_expand = prepared["freq_expander"]
    wl = _run_head(wavelength.reshape(-1), prepared["wavelength"], f_expand,
                   model_dim, out_dtype, max_tile_rows)
    ph = _run_head(phase.reshape(-1), prepared["phase"], f_expand,
                   model_dim, out_dtype, max_tile_rows)
    return wl.reshape(b, l, model_dim), ph.reshape(phase.shape[0], 1, model_dim)


# ----------------------------------------------------------------------------- params

def _init_linear(key, fan_in, fan_out):
    # PyTorch nn.Linear default: U(-1/sqrt(fan_in), 1/sqrt(fan_in)); stored as [in, out].
    kw, kb = jax.random.split(key)
    bound = 1.0 / math.sqrt(fan_in)
    w = jax.random.uniform(kw, (fan_in, fan_out), jnp.float32, -bound, bound)
    b = jax.random.uniform(kb, (1, fan_out), jnp.float32, -bound, bound)
    return w, b


def init_wavelengthphase_embedding_params(key, model_dim=MODEL_DIM):
    k_wl1, k_wl2, k_ph1, k_ph2 = jax.random.split(key, 4)
    wl_w1, wl_b1 = _init_linear(k_wl1, model_dim, model_dim)
    wl_w2, wl_b2 = _init_linear(k_wl2, model_dim, model_dim)
    ph_w1, ph_b1 = _init_linear(k_ph1, model_dim, model_dim)
    ph_w2, ph_b2 = _init_linear(k_ph2, model_dim, model_dim)
    return {
        "wavelength": (wl_w1, wl_b1, wl_w2, wl_b2),
        "phase": (ph_w1, ph_b1, ph_w2, ph_b2),
    }


# ----------------------------------------------------------------------------- reference

def _reference(params, wavelength, phase, model_dim=MODEL_DIM):
    """Pure-JAX reference for a sanity check."""
    def one(x, p):
        w1, b1, w2, b2 = p
        half = model_dim // 2
        emb_scale = math.log(10000.0) / (half - 1)
        freqs = jnp.exp(-emb_scale * jnp.arange(half, dtype=jnp.float32))
        arg = x[..., None] * freqs
        emb = jnp.concatenate([jnp.sin(arg), jnp.cos(arg)], axis=-1)
        h = emb @ w1 + b1[0]
        h = 0.5 * h * (1.0 + jnp.tanh(0.7978845608028654 * (h + 0.044715 * h ** 3)))
        return h @ w2 + b2[0]
    return one(wavelength, params["wavelength"]), one(phase[:, None], params["phase"])


if __name__ == "__main__":
    key = jax.random.PRNGKey(0)
    k_params, k_wl, k_ph = jax.random.split(key, 3)

    batch, seq = 2, 8
    raw_params = init_wavelengthphase_embedding_params(k_params, MODEL_DIM)

    wavelength = jax.random.uniform(k_wl, (batch, seq), jnp.float32, 0.4, 1.6)
    phase = jax.random.uniform(k_ph, (batch,), jnp.float32, -3.14, 3.14)

    wl_ref, ph_ref = _reference(raw_params, wavelength, phase)

    # Default (f32) path — tight numerical check.
    prepared = prepare_wavelengthphase_embedding_params(raw_params)
    wl_emb, ph_emb = wavelengthphase_embedding(prepared, wavelength, phase)
    jax.block_until_ready((wl_emb, ph_emb))

    assert wl_emb.shape == (batch, seq, MODEL_DIM)
    assert ph_emb.shape == (batch, 1, MODEL_DIM)
    assert jnp.allclose(wl_emb, wl_ref, atol=1e-3, rtol=1e-3)
    assert jnp.allclose(ph_emb, ph_ref, atol=1e-3, rtol=1e-3)

    # bf16 fast path (bf16 matmul operands + bf16 output) — looser check.
    prepared_bf16 = prepare_wavelengthphase_embedding_params(
        raw_params, matmul_dtype=jnp.bfloat16)
    wl_bf, ph_bf = wavelengthphase_embedding(prepared_bf16, wavelength, phase,
                                             out_dtype=jnp.bfloat16)
    jax.block_until_ready((wl_bf, ph_bf))
    assert jnp.allclose(wl_bf.astype(jnp.float32), wl_ref, atol=3e-2, rtol=3e-2)
    assert jnp.allclose(ph_bf.astype(jnp.float32), ph_ref, atol=3e-2, rtol=3e-2)

    print("KERNEL_OK")
</pallas_src>

<mosaic_0001>
module attributes {stable_mosaic.version = 11 : i64} {
  func.func @_head_kernel(%arg0: i32, %arg1: memref<8x8xf32, #tpu.memory_space<vmem>>, %arg2: memref<8x128xf32, #tpu.memory_space<vmem>>, %arg3: memref<128x128xf32, #tpu.memory_space<vmem>>, %arg4: memref<1x128xf32, #tpu.memory_space<vmem>>, %arg5: memref<128x128xf32, #tpu.memory_space<vmem>>, %arg6: memref<1x128xf32, #tpu.memory_space<vmem>>, %arg7: memref<8x128xf32, #tpu.memory_space<vmem>>) attributes {dimension_semantics = [#tpu.dimension_semantics<parallel>], iteration_bounds = array<i64: 1>, scalar_prefetch = 0 : i64, scratch_operands = 0 : i64, tpu.core_type = #tpu.core_type<tc>, window_params = [{transform_indices = @transform_0, window_bounds = array<i64: 8, 8>}, {pipeline_mode = #tpu.pipeline_mode<synchronous>, transform_indices = @transform_1, window_bounds = array<i64: 8, 128>}, {pipeline_mode = #tpu.pipeline_mode<synchronous>, transform_indices = @transform_2, window_bounds = array<i64: 128, 128>}, {pipeline_mode = #tpu.pipeline_mode<synchronous>, transform_indices = @transform_3, window_bounds = array<i64: 1, 128>}, {pipeline_mode = #tpu.pipeline_mode<synchronous>, transform_indices = @transform_4, window_bounds = array<i64: 128, 128>}, {pipeline_mode = #tpu.pipeline_mode<synchronous>, transform_indices = @transform_5, window_bounds = array<i64: 1, 128>}, {transform_indices = @transform_6, window_bounds = array<i64: 8, 128>}]} {
    %c0 = arith.constant 0 : index
    %c0_0 = arith.constant 0 : index
    %0 = vector.load %arg1[%c0, %c0_0] : memref<8x8xf32, #tpu.memory_space<vmem>>, vector<8x8xf32>
    %c0_1 = arith.constant 0 : index
    %c0_2 = arith.constant 0 : index
    %1 = vector.load %arg2[%c0_1, %c0_2] : memref<8x128xf32, #tpu.memory_space<vmem>>, vector<8x128xf32>
    %cst = arith.constant dense<0.000000e+00> : vector<8x128xf32>
    %2 = tpu.matmul %0, %1, %cst {dimension_numbers = #tpu.dot_dimension_numbers<[1], [0], [0], [1], [0, 0, 1, 1], [], []>} : vector<8x8xf32>, vector<8x128xf32>, vector<8x128xf32> -> vector<8x128xf32>
    %3 = math.sin %2 : vector<8x128xf32>
    %c0_3 = arith.constant 0 : index
    %c0_4 = arith.constant 0 : index
    %4 = vector.load %arg3[%c0_3, %c0_4] : memref<128x128xf32, #tpu.memory_space<vmem>>, vector<128x128xf32>
    %cst_5 = arith.constant dense<0.000000e+00> : vector<8x128xf32>
    %5 = tpu.matmul %3, %4, %cst_5 {dimension_numbers = #tpu.dot_dimension_numbers<[1], [0], [0], [1], [0, 0, 1, 1], [], []>} : vector<8x128xf32>, vector<128x128xf32>, vector<8x128xf32> -> vector<8x128xf32>
    %c0_6 = arith.constant 0 : index
    %c0_7 = arith.constant 0 : index
    %6 = vector.load %arg4[%c0_6, %c0_7] : memref<1x128xf32, #tpu.memory_space<vmem>>, vector<1x128xf32>
    %7 = vector.broadcast %6 : vector<1x128xf32> to vector<8x128xf32>
    %8 = arith.addf %5, %7 : vector<8x128xf32>
    %cst_8 = arith.constant 5.000000e-01 : f32
    %9 = vector.broadcast %cst_8 : f32 to vector<8x128xf32>
    %10 = arith.mulf %9, %8 : vector<8x128xf32>
    %cst_9 = arith.constant 4.471500e-02 : f32
    %11 = vector.broadcast %cst_9 : f32 to vector<8x128xf32>
    %12 = arith.mulf %11, %8 : vector<8x128xf32>
    %13 = arith.mulf %12, %8 : vector<8x128xf32>
    %14 = arith.mulf %13, %8 : vector<8x128xf32>
    %15 = arith.addf %8, %14 : vector<8x128xf32>
    %cst_10 = arith.constant 0.797884583 : f32
    %16 = vector.broadcast %cst_10 : f32 to vector<8x128xf32>
    %17 = arith.mulf %16, %15 : vector<8x128xf32>
    %18 = math.tanh %17 : vector<8x128xf32>
    %cst_11 = arith.constant 1.000000e+00 : f32
    %19 = vector.broadcast %cst_11 : f32 to vector<8x128xf32>
    %20 = arith.addf %19, %18 : vector<8x128xf32>
    %21 = arith.mulf %10, %20 : vector<8x128xf32>
    %c0_12 = arith.constant 0 : index
    %c0_13 = arith.constant 0 : index
    %22 = vector.load %arg5[%c0_12, %c0_13] : memref<128x128xf32, #tpu.memory_space<vmem>>, vector<128x128xf32>
    %cst_14 = arith.constant dense<0.000000e+00> : vector<8x128xf32>
    %23 = tpu.matmul %21, %22, %cst_14 {dimension_numbers = #tpu.dot_dimension_numbers<[1], [0], [0], [1], [0, 0, 1, 1], [], []>} : vector<8x128xf32>, vector<128x128xf32>, vector<8x128xf32> -> vector<8x128xf32>
    %c0_15 = arith.constant 0 : index
    %c0_16 = arith.constant 0 : index
    %24 = vector.load %arg6[%c0_15, %c0_16] : memref<1x128xf32, #tpu.memory_space<vmem>>, vector<1x128xf32>
    %25 = vector.broadcast %24 : vector<1x128xf32> to vector<8x128xf32>
    %26 = arith.addf %23, %25 : vector<8x128xf32>
    %c0_17 = arith.constant 0 : index
    %c0_18 = arith.constant 0 : index
    %27 = vector.load %arg7[%c0_17, %c0_18] : memref<8x128xf32, #tpu.memory_space<vmem>>, vector<8x128xf32>
    tpu.vector_store %arg7[%c0_17, %c0_18], %26 {strides = array<i32>} : memref<8x128xf32, #tpu.memory_space<vmem>>, vector<8x128xf32>,
    return
  }
  func.func @transform_0(%arg0: i32) -> (i32, i32) {
    %c0_i32 = arith.constant 0 : i32
    %c0_i32_0 = arith.constant 0 : i32
    return %arg0, %c0_i32 : i32, i32
  }
  func.func @transform_1(%arg0: i32) -> (i32, i32) {
    %c0_i32 = arith.constant 0 : i32
    %c0_i32_0 = arith.constant 0 : i32
    %c0_i32_1 = arith.constant 0 : i32
    return %c0_i32, %c0_i32_0 : i32, i32
  }
  func.func @transform_2(%arg0: i32) -> (i32, i32) {
    %c0_i32 = arith.constant 0 : i32
    %c0_i32_0 = arith.constant 0 : i32
    %c0_i32_1 = arith.constant 0 : i32
    return %c0_i32, %c0_i32_0 : i32, i32
  }
  func.func @transform_3(%arg0: i32) -> (i32, i32) {
    %c0_i32 = arith.constant 0 : i32
    %c0_i32_0 = arith.constant 0 : i32
    %c0_i32_1 = arith.constant 0 : i32
    return %c0_i32, %c0_i32_0 : i32, i32
  }
  func.func @transform_4(%arg0: i32) -> (i32, i32) {
    %c0_i32 = arith.constant 0 : i32
    %c0_i32_0 = arith.constant 0 : i32
    %c0_i32_1 = arith.constant 0 : i32
    return %c0_i32, %c0_i32_0 : i32, i32
  }
  func.func @transform_5(%arg0: i32) -> (i32, i32) {
    %c0_i32 = arith.constant 0 : i32
    %c0_i32_0 = arith.constant 0 : i32
    %c0_i32_1 = arith.constant 0 : i32
    return %c0_i32, %c0_i32_0 : i32, i32
  }
  func.func @transform_6(%arg0: i32) -> (i32, i32) {
    %c0_i32 = arith.constant 0 : i32
    %c0_i32_0 = arith.constant 0 : i32
    return %arg0, %c0_i32 : i32, i32
  }
}

module attributes {stable_mosaic.version = 11 : i64} {
  func.func @_head_kernel(%arg0: i32, %arg1: memref<8x8xf32, #tpu.memory_space<vmem>>, %arg2: memref<8x128xf32, #tpu.memory_space<vmem>>, %arg3: memref<128x128xf32, #tpu.memory_space<vmem>>, %arg4: memref<1x128xf32, #tpu.memory_space<vmem>>, %arg5: memref<128x128xf32, #tpu.memory_space<vmem>>, %arg6: memref<1x128xf32, #tpu.memory_space<vmem>>, %arg7: memref<8x128xf32, #tpu.memory_space<vmem>>) attributes {dimension_semantics = [#tpu.dimension_semantics<parallel>], iteration_bounds = array<i64: 1>, scalar_prefetch = 0 : i64, scratch_operands = 0 : i64, tpu.core_type = #tpu.core_type<tc>, window_params = [{transform_indices = @transform_0, window_bounds = array<i64: 8, 8>}, {pipeline_mode = #tpu.pipeline_mode<synchronous>, transform_indices = @transform_1, window_bounds = array<i64: 8, 128>}, {pipeline_mode = #tpu.pipeline_mode<synchronous>, transform_indices = @transform_2, window_bounds = array<i64: 128, 128>}, {pipeline_mode = #tpu.pipeline_mode<synchronous>, transform_indices = @transform_3, window_bounds = array<i64: 1, 128>}, {pipeline_mode = #tpu.pipeline_mode<synchronous>, transform_indices = @transform_4, window_bounds = array<i64: 128, 128>}, {pipeline_mode = #tpu.pipeline_mode<synchronous>, transform_indices = @transform_5, window_bounds = array<i64: 1, 128>}, {transform_indices = @transform_6, window_bounds = array<i64: 8, 128>}]} {
    %c0 = arith.constant 0 : index
    %c0_0 = arith.constant 0 : index
    %0 = vector.load %arg1[%c0, %c0_0] : memref<8x8xf32, #tpu.memory_space<vmem>>, vector<8x8xf32>
    %c0_1 = arith.constant 0 : index
    %c0_2 = arith.constant 0 : index
    %1 = vector.load %arg2[%c0_1, %c0_2] : memref<8x128xf32, #tpu.memory_space<vmem>>, vector<8x128xf32>
    %cst = arith.constant dense<0.000000e+00> : vector<8x128xf32>
    %2 = tpu.matmul %0, %1, %cst {dimension_numbers = #tpu.dot_dimension_numbers<[1], [0], [0], [1], [0, 0, 1, 1], [], []>} : vector<8x8xf32>, vector<8x128xf32>, vector<8x128xf32> -> vector<8x128xf32>
    %3 = math.sin %2 : vector<8x128xf32>
    %c0_3 = arith.constant 0 : index
    %c0_4 = arith.constant 0 : index
    %4 = vector.load %arg3[%c0_3, %c0_4] : memref<128x128xf32, #tpu.memory_space<vmem>>, vector<128x128xf32>
    %cst_5 = arith.constant dense<0.000000e+00> : vector<8x128xf32>
    %5 = tpu.matmul %3, %4, %cst_5 {dimension_numbers = #tpu.dot_dimension_numbers<[1], [0], [0], [1], [0, 0, 1, 1], [], []>} : vector<8x128xf32>, vector<128x128xf32>, vector<8x128xf32> -> vector<8x128xf32>
    %c0_6 = arith.constant 0 : index
    %c0_7 = arith.constant 0 : index
    %6 = vector.load %arg4[%c0_6, %c0_7] : memref<1x128xf32, #tpu.memory_space<vmem>>, vector<1x128xf32>
    %7 = vector.broadcast %6 : vector<1x128xf32> to vector<8x128xf32>
    %8 = arith.addf %5, %7 : vector<8x128xf32>
    %cst_8 = arith.constant 5.000000e-01 : f32
    %9 = vector.broadcast %cst_8 : f32 to vector<8x128xf32>
    %10 = arith.mulf %9, %8 : vector<8x128xf32>
    %cst_9 = arith.constant 4.471500e-02 : f32
    %11 = vector.broadcast %cst_9 : f32 to vector<8x128xf32>
    %12 = arith.mulf %11, %8 : vector<8x128xf32>
    %13 = arith.mulf %12, %8 : vector<8x128xf32>
    %14 = arith.mulf %13, %8 : vector<8x128xf32>
    %15 = arith.addf %8, %14 : vector<8x128xf32>
    %cst_10 = arith.constant 0.797884583 : f32
    %16 = vector.broadcast %cst_10 : f32 to vector<8x128xf32>
    %17 = arith.mulf %16, %15 : vector<8x128xf32>
    %18 = math.tanh %17 : vector<8x128xf32>
    %cst_11 = arith.constant 1.000000e+00 : f32
    %19 = vector.broadcast %cst_11 : f32 to vector<8x128xf32>
    %20 = arith.addf %19, %18 : vector<8x128xf32>
    %21 = arith.mulf %10, %20 : vector<8x128xf32>
    %c0_12 = arith.constant 0 : index
    %c0_13 = arith.constant 0 : index
    %22 = vector.load %arg5[%c0_12, %c0_13] : memref<128x128xf32, #tpu.memory_space<vmem>>, vector<128x128xf32>
    %cst_14 = arith.constant dense<0.000000e+00> : vector<8x128xf32>
    %23 = tpu.matmul %21, %22, %cst_14 {dimension_numbers = #tpu.dot_dimension_numbers<[1], [0], [0], [1], [0, 0, 1, 1], [], []>} : vector<8x128xf32>, vector<128x128xf32>, vector<8x128xf32> -> vector<8x128xf32>
    %c0_15 = arith.constant 0 : index
    %c0_16 = arith.constant 0 : index
    %24 = vector.load %arg6[%c0_15, %c0_16] : memref<1x128xf32, #tpu.memory_space<vmem>>, vector<1x128xf32>
    %25 = vector.broadcast %24 : vector<1x128xf32> to vector<8x128xf32>
    %26 = arith.addf %23, %25 : vector<8x128xf32>
    %c0_17 = arith.constant 0 : index
    %c0_18 = arith.constant 0 : index
    %27 = vector.load %arg7[%c0_17, %c0_18] : memref<8x128xf32, #tpu.memory_space<vmem>>, vector<8x128xf32>
    tpu.vector_store %arg7[%c0_17, %c0_18], %26 {strides = array<i32>} : memref<8x128xf32, #tpu.memory_space<vmem>>, vector<8x128xf32>,
    return
  }
  func.func @transform_0(%arg0: i32) -> (i32, i32) {
    %c0_i32 = arith.constant 0 : i32
    %c0_i32_0 = arith.constant 0 : i32
    return %arg0, %c0_i32 : i32, i32
  }
  func.func @transform_1(%arg0: i32) -> (i32, i32) {
    %c0_i32 = arith.constant 0 : i32
    %c0_i32_0 = arith.constant 0 : i32
    %c0_i32_1 = arith.constant 0 : i32
    return %c0_i32, %c0_i32_0 : i32, i32
  }
  func.func @transform_2(%arg0: i32) -> (i32, i32) {
    %c0_i32 = arith.constant 0 : i32
    %c0_i32_0 = arith.constant 0 : i32
    %c0_i32_1 = arith.constant 0 : i32
    return %c0_i32, %c0_i32_0 : i32, i32
  }
  func.func @transform_3(%arg0: i32) -> (i32, i32) {
    %c0_i32 = arith.constant 0 : i32
    %c0_i32_0 = arith.constant 0 : i32
    %c0_i32_1 = arith.constant 0 : i32
    return %c0_i32, %c0_i32_0 : i32, i32
  }
  func.func @transform_4(%arg0: i32) -> (i32, i32) {
    %c0_i32 = arith.constant 0 : i32
    %c0_i32_0 = arith.constant 0 : i32
    %c0_i32_1 = arith.constant 0 : i32
    return %c0_i32, %c0_i32_0 : i32, i32
  }
  func.func @transform_5(%arg0: i32) -> (i32, i32) {
    %c0_i32 = arith.constant 0 : i32
    %c0_i32_0 = arith.constant 0 : i32
    %c0_i32_1 = arith.constant 0 : i32
    return %c0_i32, %c0_i32_0 : i32, i32
  }
  func.func @transform_6(%arg0: i32) -> (i32, i32) {
    %c0_i32 = arith.constant 0 : i32
    %c0_i32_0 = arith.constant 0 : i32
    return %arg0, %c0_i32 : i32, i32
  }
}

</mosaic_0001>

<bundles_post_ra>
// kernel: wavelengthphase_embedding.3
= control target key start
LH: loop header
LB: loop body
LE: loop exit
PB: predicated region body
PF: predicated region fallthrough
CT: control target
= control target key end

     0   :  { %11 = vsyncpa [#allocation3], 0  ;;  %s742_s0 = inlined_call_operand.vmem [shape: f32[8,8], index: 0, kind: input, shape index: {}]   ;;  %s743_s1 = inlined_call_operand.vmem [shape: f32[8,128], index: 1, kind: input, shape index: {}]   ;;  %s744_s2 = inlined_call_operand.hbm [shape: f32[128,128], index: 2, kind: input, shape index: {}]   ;;  %s745_s3 = inlined_call_operand.vmem [shape: f32[1,128], index: 3, kind: input, shape index: {}]   ;;  %s746_s4 = inlined_call_operand.hbm [shape: f32[128,128], index: 4, kind: input, shape index: {}]   ;;  %s747_s5 = inlined_call_operand.vmem [shape: f32[1,128], index: 5, kind: input, shape index: {}]   ;;  %s748_s6 = inlined_call_operand.vmem [shape: f32[8,128], index: 6, kind: output, shape index: {}]  }
   0x1   :  { %12 = vsyncpa [#allocation5], 0  ;;  %s617_s21 = smov [#allocation2]  }
   0x2   :  { %s22_s22 = sshll.u32 %s617_s21, 4  ;;  %s23_s22 = int_to_ptr.vmem [resolvable:$true] %s22_s22 }
   0x3   :  { %s581_s23 = scalar_lea.vmem %s23_s22, 2048  ;;  %p586_p1 = scmp.lt.s32.totalorder %s23_s22, %s23_s22 }
   0x4   :  { %p582_p0 = scmp.ne.s32.totalorder %s23_s22, %s581_s23  ;;  %p587_p2 = scmp.lt.s32.totalorder %s581_s23, %s581_s23 }
   0x6   :  { %p588_p3 = por %p587_p2, %p586_p1 }
   0x8   :  { %p589_p4 = pnand %p588_p3, %p582_p0 }
   0xa   :  { %592 = shalt.err (!%p589_p4)
}
   0xb   :  { %s618_s24 = smov 128   ;;  %s619_s25 = smov 8  }
   0xc   :  { %28 = dma.hbm_to_vmem [thread:$0]  %s744_s2, 2048, %s23_s22, [#allocation3], %s618_s24, %s618_s24, %s619_s25  }
   0xd   :  { %s620_s28 = smov [#allocation4]  }
   0xe   :  { %s36_s29 = sshll.u32 %s620_s28, 4  ;;  %s37_s29 = int_to_ptr.vmem [resolvable:$true] %s36_s29 }
   0xf   :  { %s601_s30 = scalar_lea.vmem %s37_s29, 2048  ;;  %p606_p6 = scmp.lt.s32.totalorder %s37_s29, %s37_s29 }
  0x10   :  { %p602_p5 = scmp.ne.s32.totalorder %s37_s29, %s601_s30  ;;  %p607_p7 = scmp.lt.s32.totalorder %s601_s30, %s601_s30 }
  0x12   :  { %p608_p8 = por %p607_p7, %p606_p6 }
  0x14   :  { %p609_p9 = pnand %p608_p8, %p602_p5 }
  0x16   :  { %612 = shalt.err (!%p609_p9)
}
  0x17   :  { %42 = dma.hbm_to_vmem [thread:$0]  %s746_s4, 2048, %s37_s29, [#allocation5], %s618_s24, %s618_s24, %s619_s25  }
  0x18   :  { %613 = dma.done.wait [#allocation3], 2048  }
  0x19   :  { %614 = vsyncadd [#allocation3], 4294965248 }
  0x1a   :  { %615 = dma.done.wait [#allocation5], 2048  }
  0x1b   :  { %616 = vsyncadd [#allocation5], 4294965248  ;;  %v621_v0 = vmov 0.0   ;;  %vm622_vm0 = vmmov 0   ;;  %vm53_vm1 = vcmask 64512   ;;  %v52_v1 = vld [vmem:[%s743_s1] sm:$0xff] }
  0x1c   :  { %476 = vmatprep.subr.mxu0 %v621_v0  ;;  %478 = vmatprep.mubr.msk.f32.mxu0 %vm622_vm0, %v621_v0  ;;  %v51_v2 = vld [vmem:[%s742_s0] sm:$0xff]  ;;  %v246_v3 = vld [vmem:[#allocation2 + $0x78] sm:$0xff]  ;;  %v245_v4 = vld [vmem:[#allocation2 + $0x70] sm:$0xff]  ;;  %v623_v31 = vmov 683565275  }
  0x1d   :  { %481 = vmatprep.subr.mxu1 %v621_v0  ;;  %513 = vmatprep.mubr.msk.f32.mxu1 %vm622_vm0, %v621_v0  ;;  %v244_v5 = vld [vmem:[#allocation2 + $0x68] sm:$0xff]  ;;  %v243_v6 = vld [vmem:[#allocation2 + $0x60] sm:$0xff]  ;;  %v242_v7 = vld [vmem:[#allocation2 + $0x58] sm:$0xff]  ;;  %v624_v33 = vmov 2475754826  }
  0x1e   :  { %477 = vmatpush3.msra.mxu0 %v52_v1  ;;  %482 = vmatpush3.msra.mxu1 %v246_v3  ;;  %v241_v8 = vld [vmem:[#allocation2 + $0x50] sm:$0xff]  ;;  %v240_v9 = vld [vmem:[#allocation2 + $0x48] sm:$0xff]  ;;  %v239_v10 = vld [vmem:[#allocation2 + $0x40] sm:$0xff]  ;;  %v625_v36 = vmov 2131351028  }
  0x1f   :  { %479 = vmatmul.mubr.msk.f32.vlgmr.msra.gmra.mxu0 %vm53_vm1, %v51_v2  ;;  %516 = vmatprep.subr.mxu0 %v621_v0  ;;  %v238_v11 = vld [vmem:[#allocation2 + $0x38] sm:$0xff]  ;;  %v237_v12 = vld [vmem:[#allocation2 + $0x30] sm:$0xff]  ;;  %v236_v13 = vld [vmem:[#allocation2 + $0x28] sm:$0xff]  ;;  %v626_v39 = vmov 2102212464  }
  0x20   :  { %548 = vmatprep.mubr.msk.f32.mxu0 %vm622_vm0, %v621_v0  ;;  %483 = vmatprep.subr.mxu1 %v621_v0  ;;  %v235_v14 = vld [vmem:[#allocation2 + $0x20] sm:$0xff]  ;;  %v234_v15 = vld [vmem:[#allocation2 + $0x18] sm:$0xff]  ;;  %v233_v16 = vld [vmem:[#allocation2 + $0x10] sm:$0xff]  ;;  %v627_v42 = vmov 920167782  }
  0x21   :  { %484 = vmatpush3.msra.mxu1 %v245_v4  ;;  %v232_v17 = vld [vmem:[#allocation2 + $0x8] sm:$0xff]  ;;  %v231_v18 = vld [vmem:[#allocation2] sm:$0xff]  ;;  %v628_v45 = vmov 1326507024  }
  0x22   :  { %485 = vmatprep.subr.mxu1 %v621_v0 }
  0x23   :  { %486 = vmatpush3.msra.mxu1 %v244_v5 }
  0x24   :  { %487 = vmatprep.subr.mxu1 %v621_v0 }
  0x25   :  { %488 = vmatpush3.msra.mxu1 %v243_v6 }
  0x26   :  { %489 = vmatprep.subr.mxu1 %v621_v0 }
  0x27   :  { %490 = vmatpush3.msra.mxu1 %v242_v7 }
  0x28   :  { %491 = vmatprep.subr.mxu1 %v621_v0 }
  0x29   :  { %492 = vmatpush3.msra.mxu1 %v241_v8 }
  0x2a   :  { %493 = vmatprep.subr.mxu1 %v621_v0 }
  0x2b   :  { %494 = vmatpush3.msra.mxu1 %v240_v9 }
  0x2c   :  { %495 = vmatprep.subr.mxu1 %v621_v0 }
  0x2d   :  { %496 = vmatpush3.msra.mxu1 %v239_v10 }
  0x2e   :  { %497 = vmatprep.subr.mxu1 %v621_v0 }
  0x2f   :  { %498 = vmatpush3.msra.mxu1 %v238_v11 }
  0x30   :  { %499 = vmatprep.subr.mxu1 %v621_v0 }
  0x31   :  { %500 = vmatpush3.msra.mxu1 %v237_v12 }
  0x32   :  { %501 = vmatprep.subr.mxu1 %v621_v0 }
  0x33   :  { %502 = vmatpush3.msra.mxu1 %v236_v13 }
  0x34   :  { %503 = vmatprep.subr.mxu1 %v621_v0 }
  0x35   :  { %504 = vmatpush3.msra.mxu1 %v235_v14 }
  0x36   :  { %505 = vmatprep.subr.mxu1 %v621_v0 }
  0x37   :  { %506 = vmatpush3.msra.mxu1 %v234_v15 }
  0x38   :  { %507 = vmatprep.subr.mxu1 %v621_v0 }
  0x39   :  { %508 = vmatpush3.msra.mxu1 %v233_v16 }
  0x3a   :  { %509 = vmatprep.subr.mxu1 %v621_v0 }
  0x3b   :  { %510 = vmatpush3.msra.mxu1 %v232_v17 }
  0x3c   :  { %511 = vmatprep.subr.mxu1 %v621_v0 }
  0x3d   :  { %512 = vmatpush3.msra.mxu1 %v231_v18 }
  0xdf   :  { %v697_v19 = vpop.f32.mrf.mxu0 }
  0xe0   :  { %v130_v20 = vand.u32 2139095040, %v697_v19  ;;  %v127_v25 = vand.u32 2147483647, %v697_v19  ;;  %vm129_vm9 = vcmp.lt.s32.totalorder %v697_v19, 0  ;;  %vm219_vm14 = vweird.f32 %v697_v19 }
  0xe1   :  { %v480_v21 = vpop.f32.mrf.mxu0 }
  0xe2   :  { %v131_v22 = vshrl.u32 %v130_v20, 23  ;;  %v134_v28 = vand.u32 8388607, %v127_v25  ;;  %vm128_vm10 = vcmp.le.f32.partialorder %v127_v25, 0.7853982 }
  0xe4   :  { %v434_v23 = vadd.s32 4294967169, %v131_v22  ;;  %v135_v47 = vor.u32 8388608, %v134_v28 }
  0xe6   :  { %v137_v24 = vadd.s32 1, %v434_v23  ;;  %v175_v61 = vshll.u32 %v135_v47, 8 }
  0xe8   :  { %vm138_vm2 = vcmp.gt.s32.totalorder %v137_v24, 0 }
  0xe9   :  { %v139_v26 = vsel %vm138_vm2, %v137_v24, 0 }
  0xea   :  { %v141_v27 = vand.u32 31, %v139_v26  ;;  %v140_v30 = vshrl.u32 %v139_v26, 5 }
  0xec   :  { %v142_v29 = vsub.s32 32, %v141_v27  ;;  %v144_v32 = vshll.u32 %v623_v31, %v141_v27  ;;  %v147_v34 = vshll.u32 %v624_v33, %v141_v27  ;;  %v150_v38 = vshll.u32 %v625_v36, %v141_v27 }
  0xed   :  { %v153_v41 = vshll.u32 %v626_v39, %v141_v27  ;;  %v156_v44 = vshll.u32 %v627_v42, %v141_v27  ;;  %vm159_vm3 = vcmp.lt.s32.totalorder %v140_v30, 1  ;;  %vm162_vm4 = vcmp.lt.s32.totalorder %v140_v30, 4 }
  0xee   :  { %v145_v35 = vshrl.u32 %v624_v33, %v142_v29  ;;  %v148_v37 = vshrl.u32 %v625_v36, %v142_v29  ;;  %v151_v40 = vshrl.u32 %v626_v39, %v142_v29  ;;  %v154_v43 = vshrl.u32 %v627_v42, %v142_v29 }
  0xef   :  { %v157_v46 = vshrl.u32 %v628_v45, %v142_v29  ;;  %v143_v56 = vshrl.u32 %v623_v31, %v142_v29  ;;  %vm161_vm5 = vcmp.lt.s32.totalorder %v140_v30, 3  ;;  %vm160_vm6 = vcmp.lt.s32.totalorder %v140_v30, 2 }
  0xf0   :  { %v146_v48 = vor.u32 %v145_v35, %v144_v32  ;;  %v149_v49 = vor.u32 %v148_v37, %v147_v34  ;;  %v152_v50 = vor.u32 %v151_v40, %v150_v38  ;;  %v155_v51 = vor.u32 %v154_v43, %v153_v41 }
  0xf1   :  { %v158_v52 = vor.u32 %v157_v46, %v156_v44 }
  0xf2   :  { %v164_v53 = vsel %vm162_vm4, %v152_v50, 2102212464  ;;  %v167_v54 = vsel %vm159_vm3, %v146_v48, %v149_v49  ;;  %v171_v55 = vsel %vm159_vm3, %v149_v49, %v152_v50  ;;  %v168_v57 = vsel %vm162_vm4, %v155_v51, 920167782 }
  0xf3   :  { %v172_v58 = vsel %vm162_vm4, %v158_v52, 1326507024  ;;  %v169_v59 = vsel %vm161_vm5, %v152_v50, %v168_v57  ;;  %v163_v62 = vsel %vm159_vm3, %v143_v56, %v146_v48  ;;  %v165_v63 = vsel %vm161_vm5, %v149_v49, %v164_v53  ;;  %v348_v50 = vld [vmem:[#allocation4 + $0x78] sm:$0xff]  ;;  %v346_v52 = vld [vmem:[#allocation4 + $0x68] sm:$0xff]  ;;  %v345_v53 = vld [vmem:[#allocation4 + $0x60] sm:$0xff] }
  0xf4   :  { %v173_v60 = vsel %vm161_vm5, %v155_v51, %v172_v58  ;;  %v170_v1 = vsel %vm160_vm6, %v167_v54, %v169_v59  ;;  %v166_v7 = vsel %vm160_vm6, %v163_v62, %v165_v63  ;;  %517 = vmatpush3.msra.mxu0 %v348_v50  ;;  %v347_v51 = vld [vmem:[#allocation4 + $0x70] sm:$0xff]  ;;  %v341_v56 = vld [vmem:[#allocation4 + $0x40] sm:$0xff]  ;;  %v340_v57 = vld [vmem:[#allocation4 + $0x38] sm:$0xff] }
  0xf5   :  { %v174_v2 = vsel %vm160_vm6, %v171_v55, %v173_v60  ;;  %v706_v5 = vmul.u32.u64.low %v175_v61, %v170_v1  ;;  %v707_v6 = vmul.u32.u64.high %v175_v61, %v170_v1, %v706_v5  ;;  %v182_v9 = vmul.u32 %v175_v61, %v166_v7  ;;  %518 = vmatprep.subr.mxu0 %v621_v0  ;;  %v343_v54 = vld [vmem:[#allocation4 + $0x50] sm:$0xff]  ;;  %v342_v55 = vld [vmem:[#allocation4 + $0x48] sm:$0xff]  ;;  %v337_v60 = vld [vmem:[#allocation4 + $0x20] sm:$0xff] }
  0xf6   :  { %v703_v3 = vmul.u32.u64.low %v175_v61, %v174_v2  ;;  %v704_v4 = vmul.u32.u64.high %v175_v61, %v174_v2, %v703_v3  ;;  %519 = vmatpush3.msra.mxu0 %v347_v51  ;;  %v339_v58 = vld [vmem:[#allocation4 + $0x30] sm:$0xff]  ;;  %v338_v59 = vld [vmem:[#allocation4 + $0x28] sm:$0xff]  ;;  %v336_v61 = vld [vmem:[#allocation4 + $0x18] sm:$0xff] }
  0xf7   :  { %v185_v8 = vadd.s32 1, %v707_v6  ;;  %520 = vmatprep.subr.mxu0 %v621_v0  ;;  %v335_v62 = vld [vmem:[#allocation4 + $0x10] sm:$0xff]  ;;  %v334_v63 = vld [vmem:[#allocation4 + $0x8] sm:$0xff]  ;;  %v333_v1 = vld [vmem:[#allocation4] sm:$0xff] }
  0xf8   :  { %vm184_vm7 = vc.u32 %v704_v4, %v706_v5  ;;  %v183_v22 = vadd.s32 %v706_v5, %v704_v4  ;;  %521 = vmatpush3.msra.mxu0 %v346_v52  ;;  %v438_v2 = vld [vmem:[%s745_s3] ss:$0 sm:$0xff] }
  0xf9   :  { %v186_v10 = vsel %vm184_vm7, %v185_v8, %v707_v6  ;;  %522 = vmatprep.subr.mxu0 %v621_v0 }
  0xfa   :  { %v187_v11 = vadd.s32 %v186_v10, %v182_v9  ;;  %523 = vmatpush3.msra.mxu0 %v345_v53 }
  0xfb   :  { %524 = vmatprep.subr.mxu0 %v621_v0 }
  0xfc   :  { %v188_v12 = vadd.s32 536870912, %v187_v11 }
  0xfe   :  { %v189_v13 = vshrl.u32 %v188_v12, 30 }
 0x100   :  { %v190_v14 = vshll.u32 %v189_v13, 30  ;;  %v213_v36 = vsub.s32 4, %v189_v13 }
 0x102   :  { %v191_v15 = vsub.s32 %v187_v11, %v190_v14  ;;  %v214_v39 = vsel %vm129_vm9, %v213_v36, %v189_v13 }
 0x103   :  { %v216_v40 = vsel %vm128_vm10, 0, %v214_v39 }
 0x104   :  { %v193_v16 = vsub.s32 0, %v191_v15  ;;  %v220_v41 = vadd.s32 3, %v216_v40 }
 0x106   :  { %v435_v17 = vmin.u32 %v193_v16, %v191_v15  ;;  %v221_v42 = vand.u32 3, %v220_v41 }
 0x108   :  { %v195_v18 = vclz %v435_v17  ;;  %vm226_vm11 = vcmp.eq.s32.totalorder %v221_v42, 2  ;;  %vm223_vm12 = vcmp.eq.s32.totalorder %v221_v42, 0  ;;  %vm222_vm13 = vcmp.lt.s32.totalorder %v221_v42, 2 }
 0x10a   :  { %v436_v20 = vadd.s32 4294967294, %v195_v18 }
 0x10c   :  { %vm437_vm8 = vcmp.lt.s32.totalorder %v436_v20, 0 }
 0x10d   :  { %v198_v21 = vsel %vm437_vm8, 0, %v436_v20 }
 0x10e   :  { %v199_v23 = vsub.s32 32, %v198_v21  ;;  %v203_v24 = vsub.s32 4294967266, %v198_v21  ;;  %v200_v26 = vshll.u32 %v191_v15, %v198_v21 }
 0x110   :  { %v201_v27 = vshrl.u32 %v183_v22, %v199_v23  ;;  %v204_v28 = vadd.s32 127, %v203_v24 }
 0x112   :  { %v202_v29 = vor.u32 %v201_v27, %v200_v26  ;;  %v205_v30 = vshll.u32 %v204_v28, 23 }
 0x114   :  { %v206_v31 = vor.u32 4788187, %v205_v30  ;;  %v209_v33 = vcvt.s32.f32 %v202_v29 }
 0x116   :  { %v207_v32 = vand.u32 2147483647, %v206_v31 }
 0x118   :  { %v210_v34 = vmul.f32 %v209_v33, %v207_v32 }
 0x11a   :  { %v211_v35 = vxor.u32 2147483648, %v210_v34 }
 0x11c   :  { %v212_v37 = vsel %vm129_vm9, %v211_v35, %v210_v34 }
 0x11d   :  { %v215_v38 = vsel %vm128_vm10, %v697_v19, %v212_v37  ;;  %v344_v19 = vld [vmem:[#allocation4 + $0x58] sm:$0xff] }
 0x11e   :  { %567 = vcosq.f32 %v215_v38  ;;  %525 = vmatpush3.msra.mxu0 %v344_v19 }
 0x11f   :  { %569 = vsinq.f32 %v215_v38  ;;  %526 = vmatprep.subr.mxu0 %v621_v0 }
 0x120   :  { %527 = vmatpush3.msra.mxu0 %v343_v54 }
 0x121   :  { %528 = vmatprep.subr.mxu0 %v621_v0 }
 0x122   :  { %529 = vmatpush3.msra.mxu0 %v342_v55 }
 0x123   :  { %530 = vmatprep.subr.mxu0 %v621_v0 }
 0x124   :  { %531 = vmatpush3.msra.mxu0 %v341_v56 }
 0x125   :  { %532 = vmatprep.subr.mxu0 %v621_v0 }
 0x126   :  { %533 = vmatpush3.msra.mxu0 %v340_v57 }
 0x127   :  { %534 = vmatprep.subr.mxu0 %v621_v0 }
 0x128   :  { %535 = vmatpush3.msra.mxu0 %v339_v58 }
 0x129   :  { %536 = vmatprep.subr.mxu0 %v621_v0 }
 0x12a   :  { %537 = vmatpush3.msra.mxu0 %v338_v59 }
 0x12b   :  { %v568_v43 = vpop.eup %567  ;;  %538 = vmatprep.subr.mxu0 %v621_v0 }
 0x12c   :  { %v570_v44 = vpop.eup %569  ;;  %v227_v45 = vxor.u32 2147483648, %v568_v43  ;;  %539 = vmatpush3.msra.mxu0 %v337_v60 }
 0x12d   :  { %v224_v46 = vxor.u32 2147483648, %v570_v44  ;;  %540 = vmatprep.subr.mxu0 %v621_v0 }
 0x12e   :  { %v228_v47 = vsel %vm226_vm11, %v227_v45, %v570_v44  ;;  %541 = vmatpush3.msra.mxu0 %v336_v61 }
 0x12f   :  { %v225_v48 = vsel %vm223_vm12, %v568_v43, %v224_v46  ;;  %542 = vmatprep.subr.mxu0 %v621_v0 }
 0x130   :  { %v229_v25 = vsel %vm222_vm13, %v225_v48, %v228_v47  ;;  %543 = vmatpush3.msra.mxu0 %v335_v62 }
 0x131   :  { %v230_v49 = vsel %vm219_vm14, nan, %v229_v25  ;;  %544 = vmatprep.subr.mxu0 %v621_v0 }
 0x132   :  { %514 = vmatmul.mubr.f32.vlgmr.msra.gmra.mxu1 %v230_v49  ;;  %545 = vmatpush3.msra.mxu0 %v334_v63 }
 0x133   :  { %546 = vmatprep.subr.mxu0 %v621_v0  ;;  %v439_v0 = vld [vmem:[%s747_s5] ss:$0 sm:$0xff] }
 0x134   :  { %547 = vmatpush3.msra.mxu0 %v333_v1 }
 0x1f2   :  { %v320_v3 = vpop.f32.mrf.mxu1 }
 0x1f3   :  { %v321_v4 = vadd.f32 %v438_v2, %v320_v3 }
 0x1f4   :  { %v515_v5 = vpop.f32.mrf.mxu1 }
 0x1f5   :  { %v325_v6 = vmul.f32 0.044715, %v321_v4  ;;  %v324_v12 = vmul.f32 0.5, %v321_v4 }
 0x1f7   :  { %v326_v7 = vmul.f32 %v325_v6, %v321_v4 }
 0x1f9   :  { %v327_v8 = vmul.f32 %v326_v7, %v321_v4 }
 0x1fb   :  { %v328_v9 = vadd.f32 %v327_v8, %v321_v4 }
 0x1fd   :  { %v329_v10 = vmul.f32 0.7978846, %v328_v9 }
 0x1ff   :  { %571 = vtanh.f32 %v329_v10 }
 0x20c   :  { %v572_v11 = vpop.eup %571 }
 0x20d   :  { %v331_v13 = vadd.f32 1.0, %v572_v11 }
 0x20f   :  { %v332_v14 = vmul.f32 %v331_v13, %v324_v12 }
 0x211   :  { %549 = vmatmul.mubr.f32.vlgmr.msra.gmra.mxu0 %v332_v14 }
 0x2d1   :  { %v422_v15 = vpop.f32.mrf.mxu0 }
 0x2d2   :  { %v423_v16 = vadd.f32 %v439_v0, %v422_v15 }
 0x2d3   :  { %v550_v17 = vpop.f32.mrf.mxu0 }
 0x2d4   :  { %426 = vst [vmem:[%s748_s6] sm:$0xff] %v423_v16 }
 0x2d5   :  { %431 = vsyncpa [#allocation3], 1 }
 0x2d6   :  { %432 = vsyncpa [#allocation5], 1 }

// kernel: wavelengthphase_embedding.2
= control target key start
LH: loop header
LB: loop body
LE: loop exit
PB: predicated region body
PF: predicated region fallthrough
CT: control target
= control target key end

     0   :  { %vm25_vm0 = vcmask 64512   ;;  %v539_v0 = vmov 0.0   ;;  %vm540_vm1 = vmmov 0   ;;  %v541_v31 = vmov 683565275   ;;  %s750_s1 = inlined_call_operand.vmem [shape: f32[8,128], index: 1, kind: input, shape index: {}]   ;;  %s751_s0 = inlined_call_operand.vmem [shape: f32[8,8], index: 0, kind: input, shape index: {}]   ;;  %s752_s2 = inlined_call_operand.vmem [shape: f32[128,128], index: 2, kind: input, shape index: {}]   ;;  %s753_s4 = inlined_call_operand.vmem [shape: f32[128,128], index: 4, kind: input, shape index: {}]   ;;  %s754_s3 = inlined_call_operand.vmem [shape: f32[1,128], index: 3, kind: input, shape index: {}]   ;;  %s755_s5 = inlined_call_operand.vmem [shape: f32[1,128], index: 5, kind: input, shape index: {}]   ;;  %s756_s6 = inlined_call_operand.vmem [shape: f32[8,128], index: 6, kind: output, shape index: {}]  }
   0x1   :  { %446 = vmatprep.subr.mxu0 %v539_v0  ;;  %v24_v1 = vld [vmem:[%s750_s1] sm:$0xff]  ;;  %448 = vmatprep.mubr.msk.f32.mxu0 %vm540_vm1, %v539_v0  ;;  %v218_v3 = vld [vmem:[%s752_s2 + $0x78] sm:$0xff]  ;;  %v217_v4 = vld [vmem:[%s752_s2 + $0x70] sm:$0xff]  ;;  %v542_v33 = vmov 2475754826  }
   0x2   :  { %v23_v2 = vld [vmem:[%s751_s0] sm:$0xff]  ;;  %447 = vmatpush3.msra.mxu0 %v24_v1  ;;  %451 = vmatprep.subr.mxu1 %v539_v0  ;;  %v216_v5 = vld [vmem:[%s752_s2 + $0x68] sm:$0xff]  ;;  %v214_v7 = vld [vmem:[%s752_s2 + $0x58] sm:$0xff]  ;;  %v543_v36 = vmov 2131351028  }
   0x3   :  { %449 = vmatmul.mubr.msk.f32.vlgmr.msra.gmra.mxu0 %vm25_vm0, %v23_v2  ;;  %483 = vmatprep.mubr.msk.f32.mxu1 %vm540_vm1, %v539_v0  ;;  %v215_v6 = vld [vmem:[%s752_s2 + $0x60] sm:$0xff]  ;;  %v213_v8 = vld [vmem:[%s752_s2 + $0x50] sm:$0xff]  ;;  %v212_v9 = vld [vmem:[%s752_s2 + $0x48] sm:$0xff]  ;;  %v544_v39 = vmov 2102212464  }
   0x4   :  { %486 = vmatprep.subr.mxu0 %v539_v0  ;;  %518 = vmatprep.mubr.msk.f32.mxu0 %vm540_vm1, %v539_v0  ;;  %v211_v10 = vld [vmem:[%s752_s2 + $0x40] sm:$0xff]  ;;  %v210_v11 = vld [vmem:[%s752_s2 + $0x38] sm:$0xff]  ;;  %v209_v12 = vld [vmem:[%s752_s2 + $0x30] sm:$0xff]  ;;  %v545_v42 = vmov 920167782  }
   0x5   :  { %452 = vmatpush3.msra.mxu1 %v218_v3  ;;  %v208_v13 = vld [vmem:[%s752_s2 + $0x28] sm:$0xff]  ;;  %v207_v14 = vld [vmem:[%s752_s2 + $0x20] sm:$0xff]  ;;  %v206_v15 = vld [vmem:[%s752_s2 + $0x18] sm:$0xff]  ;;  %v546_v45 = vmov 1326507024  }
   0x6   :  { %453 = vmatprep.subr.mxu1 %v539_v0  ;;  %v205_v16 = vld [vmem:[%s752_s2 + $0x10] sm:$0xff]  ;;  %v204_v17 = vld [vmem:[%s752_s2 + $0x8] sm:$0xff]  ;;  %v203_v18 = vld [vmem:[%s752_s2] sm:$0xff] }
   0x7   :  { %454 = vmatpush3.msra.mxu1 %v217_v4 }
   0x8   :  { %455 = vmatprep.subr.mxu1 %v539_v0 }
   0x9   :  { %456 = vmatpush3.msra.mxu1 %v216_v5 }
   0xa   :  { %457 = vmatprep.subr.mxu1 %v539_v0 }
   0xb   :  { %458 = vmatpush3.msra.mxu1 %v215_v6 }
   0xc   :  { %459 = vmatprep.subr.mxu1 %v539_v0 }
   0xd   :  { %460 = vmatpush3.msra.mxu1 %v214_v7 }
   0xe   :  { %461 = vmatprep.subr.mxu1 %v539_v0 }
   0xf   :  { %462 = vmatpush3.msra.mxu1 %v213_v8 }
  0x10   :  { %463 = vmatprep.subr.mxu1 %v539_v0 }
  0x11   :  { %464 = vmatpush3.msra.mxu1 %v212_v9 }
  0x12   :  { %465 = vmatprep.subr.mxu1 %v539_v0 }
  0x13   :  { %466 = vmatpush3.msra.mxu1 %v211_v10 }
  0x14   :  { %467 = vmatprep.subr.mxu1 %v539_v0 }
  0x15   :  { %468 = vmatpush3.msra.mxu1 %v210_v11 }
  0x16   :  { %469 = vmatprep.subr.mxu1 %v539_v0 }
  0x17   :  { %470 = vmatpush3.msra.mxu1 %v209_v12 }
  0x18   :  { %471 = vmatprep.subr.mxu1 %v539_v0 }
  0x19   :  { %472 = vmatpush3.msra.mxu1 %v208_v13 }
  0x1a   :  { %473 = vmatprep.subr.mxu1 %v539_v0 }
  0x1b   :  { %474 = vmatpush3.msra.mxu1 %v207_v14 }
  0x1c   :  { %475 = vmatprep.subr.mxu1 %v539_v0 }
  0x1d   :  { %476 = vmatpush3.msra.mxu1 %v206_v15 }
  0x1e   :  { %477 = vmatprep.subr.mxu1 %v539_v0 }
  0x1f   :  { %478 = vmatpush3.msra.mxu1 %v205_v16 }
  0x20   :  { %479 = vmatprep.subr.mxu1 %v539_v0 }
  0x21   :  { %480 = vmatpush3.msra.mxu1 %v204_v17 }
  0x22   :  { %481 = vmatprep.subr.mxu1 %v539_v0 }
  0x23   :  { %482 = vmatpush3.msra.mxu1 %v203_v18 }
  0xc3   :  { %v657_v19 = vpop.f32.mrf.mxu0 }
  0xc4   :  { %v102_v20 = vand.u32 2139095040, %v657_v19  ;;  %v99_v25 = vand.u32 2147483647, %v657_v19  ;;  %vm101_vm9 = vcmp.lt.s32.totalorder %v657_v19, 0  ;;  %vm191_vm14 = vweird.f32 %v657_v19 }
  0xc5   :  { %v450_v21 = vpop.f32.mrf.mxu0 }
  0xc6   :  { %v103_v22 = vshrl.u32 %v102_v20, 23  ;;  %v106_v28 = vand.u32 8388607, %v99_v25  ;;  %vm100_vm10 = vcmp.le.f32.partialorder %v99_v25, 0.7853982 }
  0xc8   :  { %v404_v23 = vadd.s32 4294967169, %v103_v22  ;;  %v107_v47 = vor.u32 8388608, %v106_v28 }
  0xca   :  { %v109_v24 = vadd.s32 1, %v404_v23  ;;  %v147_v61 = vshll.u32 %v107_v47, 8 }
  0xcc   :  { %vm110_vm2 = vcmp.gt.s32.totalorder %v109_v24, 0 }
  0xcd   :  { %v111_v26 = vsel %vm110_vm2, %v109_v24, 0 }
  0xce   :  { %v113_v27 = vand.u32 31, %v111_v26  ;;  %v112_v30 = vshrl.u32 %v111_v26, 5 }
  0xd0   :  { %v114_v29 = vsub.s32 32, %v113_v27  ;;  %v116_v32 = vshll.u32 %v541_v31, %v113_v27  ;;  %v119_v34 = vshll.u32 %v542_v33, %v113_v27  ;;  %v122_v38 = vshll.u32 %v543_v36, %v113_v27 }
  0xd1   :  { %v125_v41 = vshll.u32 %v544_v39, %v113_v27  ;;  %v128_v44 = vshll.u32 %v545_v42, %v113_v27  ;;  %vm131_vm3 = vcmp.lt.s32.totalorder %v112_v30, 1  ;;  %vm134_vm4 = vcmp.lt.s32.totalorder %v112_v30, 4 }
  0xd2   :  { %v117_v35 = vshrl.u32 %v542_v33, %v114_v29  ;;  %v120_v37 = vshrl.u32 %v543_v36, %v114_v29  ;;  %v123_v40 = vshrl.u32 %v544_v39, %v114_v29  ;;  %v126_v43 = vshrl.u32 %v545_v42, %v114_v29 }
  0xd3   :  { %v129_v46 = vshrl.u32 %v546_v45, %v114_v29  ;;  %v115_v56 = vshrl.u32 %v541_v31, %v114_v29  ;;  %vm133_vm5 = vcmp.lt.s32.totalorder %v112_v30, 3  ;;  %vm132_vm6 = vcmp.lt.s32.totalorder %v112_v30, 2 }
  0xd4   :  { %v118_v48 = vor.u32 %v117_v35, %v116_v32  ;;  %v121_v49 = vor.u32 %v120_v37, %v119_v34  ;;  %v124_v50 = vor.u32 %v123_v40, %v122_v38  ;;  %v127_v51 = vor.u32 %v126_v43, %v125_v41 }
  0xd5   :  { %v130_v52 = vor.u32 %v129_v46, %v128_v44 }
  0xd6   :  { %v136_v53 = vsel %vm134_vm4, %v124_v50, 2102212464  ;;  %v139_v54 = vsel %vm131_vm3, %v118_v48, %v121_v49  ;;  %v143_v55 = vsel %vm131_vm3, %v121_v49, %v124_v50  ;;  %v140_v57 = vsel %vm134_vm4, %v127_v51, 920167782 }
  0xd7   :  { %v144_v58 = vsel %vm134_vm4, %v130_v52, 1326507024  ;;  %v141_v59 = vsel %vm133_vm5, %v124_v50, %v140_v57  ;;  %v135_v62 = vsel %vm131_vm3, %v115_v56, %v118_v48  ;;  %v137_v63 = vsel %vm133_vm5, %v121_v49, %v136_v53  ;;  %v320_v50 = vld [vmem:[%s753_s4 + $0x78] sm:$0xff]  ;;  %v317_v52 = vld [vmem:[%s753_s4 + $0x60] sm:$0xff] }
  0xd8   :  { %v145_v60 = vsel %vm133_vm5, %v127_v51, %v144_v58  ;;  %v142_v1 = vsel %vm132_vm6, %v139_v54, %v141_v59  ;;  %v138_v7 = vsel %vm132_vm6, %v135_v62, %v137_v63  ;;  %487 = vmatpush3.msra.mxu0 %v320_v50  ;;  %v319_v51 = vld [vmem:[%s753_s4 + $0x70] sm:$0xff]  ;;  %v316_v53 = vld [vmem:[%s753_s4 + $0x58] sm:$0xff]  ;;  %v313_v56 = vld [vmem:[%s753_s4 + $0x40] sm:$0xff] }
  0xd9   :  { %v146_v2 = vsel %vm132_vm6, %v143_v55, %v145_v60  ;;  %v666_v5 = vmul.u32.u64.low %v147_v61, %v142_v1  ;;  %v667_v6 = vmul.u32.u64.high %v147_v61, %v142_v1, %v666_v5  ;;  %v154_v9 = vmul.u32 %v147_v61, %v138_v7  ;;  %488 = vmatprep.subr.mxu0 %v539_v0  ;;  %v315_v54 = vld [vmem:[%s753_s4 + $0x50] sm:$0xff]  ;;  %v314_v55 = vld [vmem:[%s753_s4 + $0x48] sm:$0xff]  ;;  %v312_v57 = vld [vmem:[%s753_s4 + $0x38] sm:$0xff] }
  0xda   :  { %v663_v3 = vmul.u32.u64.low %v147_v61, %v146_v2  ;;  %v664_v4 = vmul.u32.u64.high %v147_v61, %v146_v2, %v663_v3  ;;  %489 = vmatpush3.msra.mxu0 %v319_v51  ;;  %v311_v58 = vld [vmem:[%s753_s4 + $0x30] sm:$0xff]  ;;  %v310_v59 = vld [vmem:[%s753_s4 + $0x28] sm:$0xff]  ;;  %v309_v60 = vld [vmem:[%s753_s4 + $0x20] sm:$0xff] }
  0xdb   :  { %v157_v8 = vadd.s32 1, %v667_v6  ;;  %490 = vmatprep.subr.mxu0 %v539_v0  ;;  %v308_v61 = vld [vmem:[%s753_s4 + $0x18] sm:$0xff]  ;;  %v307_v62 = vld [vmem:[%s753_s4 + $0x10] sm:$0xff]  ;;  %v306_v63 = vld [vmem:[%s753_s4 + $0x8] sm:$0xff] }
  0xdc   :  { %vm156_vm7 = vc.u32 %v664_v4, %v666_v5  ;;  %v155_v22 = vadd.s32 %v666_v5, %v664_v4  ;;  %v305_v1 = vld [vmem:[%s753_s4] sm:$0xff] }
  0xdd   :  { %v158_v10 = vsel %vm156_vm7, %v157_v8, %v667_v6  ;;  %v408_v2 = vld [vmem:[%s754_s3] ss:$0 sm:$0xff] }
  0xde   :  { %v159_v11 = vadd.s32 %v158_v10, %v154_v9 }
  0xe0   :  { %v160_v12 = vadd.s32 536870912, %v159_v11 }
  0xe2   :  { %v161_v13 = vshrl.u32 %v160_v12, 30 }
  0xe4   :  { %v162_v14 = vshll.u32 %v161_v13, 30  ;;  %v185_v36 = vsub.s32 4, %v161_v13 }
  0xe6   :  { %v163_v15 = vsub.s32 %v159_v11, %v162_v14  ;;  %v186_v39 = vsel %vm101_vm9, %v185_v36, %v161_v13 }
  0xe7   :  { %v188_v40 = vsel %vm100_vm10, 0, %v186_v39 }
  0xe8   :  { %v165_v16 = vsub.s32 0, %v163_v15  ;;  %v192_v41 = vadd.s32 3, %v188_v40 }
  0xea   :  { %v405_v17 = vmin.u32 %v165_v16, %v163_v15  ;;  %v193_v42 = vand.u32 3, %v192_v41 }
  0xec   :  { %v167_v18 = vclz %v405_v17  ;;  %vm198_vm11 = vcmp.eq.s32.totalorder %v193_v42, 2  ;;  %vm195_vm12 = vcmp.eq.s32.totalorder %v193_v42, 0  ;;  %vm194_vm13 = vcmp.lt.s32.totalorder %v193_v42, 2 }
  0xee   :  { %v406_v20 = vadd.s32 4294967294, %v167_v18 }
  0xf0   :  { %vm407_vm8 = vcmp.lt.s32.totalorder %v406_v20, 0 }
  0xf1   :  { %v170_v21 = vsel %vm407_vm8, 0, %v406_v20 }
  0xf2   :  { %v171_v23 = vsub.s32 32, %v170_v21  ;;  %v175_v24 = vsub.s32 4294967266, %v170_v21  ;;  %v172_v26 = vshll.u32 %v163_v15, %v170_v21 }
  0xf4   :  { %v173_v27 = vshrl.u32 %v155_v22, %v171_v23  ;;  %v176_v28 = vadd.s32 127, %v175_v24 }
  0xf6   :  { %v174_v29 = vor.u32 %v173_v27, %v172_v26  ;;  %v177_v30 = vshll.u32 %v176_v28, 23 }
  0xf8   :  { %v178_v31 = vor.u32 4788187, %v177_v30  ;;  %v181_v33 = vcvt.s32.f32 %v174_v29 }
  0xfa   :  { %v179_v32 = vand.u32 2147483647, %v178_v31 }
  0xfc   :  { %v182_v34 = vmul.f32 %v181_v33, %v179_v32 }
  0xfe   :  { %v183_v35 = vxor.u32 2147483648, %v182_v34 }
 0x100   :  { %v184_v37 = vsel %vm101_vm9, %v183_v35, %v182_v34 }
 0x101   :  { %v187_v38 = vsel %vm100_vm10, %v657_v19, %v184_v37  ;;  %v318_v19 = vld [vmem:[%s753_s4 + $0x68] sm:$0xff] }
 0x102   :  { %533 = vcosq.f32 %v187_v38  ;;  %491 = vmatpush3.msra.mxu0 %v318_v19 }
 0x103   :  { %535 = vsinq.f32 %v187_v38  ;;  %492 = vmatprep.subr.mxu0 %v539_v0 }
 0x104   :  { %493 = vmatpush3.msra.mxu0 %v317_v52 }
 0x105   :  { %494 = vmatprep.subr.mxu0 %v539_v0 }
 0x106   :  { %495 = vmatpush3.msra.mxu0 %v316_v53 }
 0x107   :  { %496 = vmatprep.subr.mxu0 %v539_v0 }
 0x108   :  { %497 = vmatpush3.msra.mxu0 %v315_v54 }
 0x109   :  { %498 = vmatprep.subr.mxu0 %v539_v0 }
 0x10a   :  { %499 = vmatpush3.msra.mxu0 %v314_v55 }
 0x10b   :  { %500 = vmatprep.subr.mxu0 %v539_v0 }
 0x10c   :  { %501 = vmatpush3.msra.mxu0 %v313_v56 }
 0x10d   :  { %502 = vmatprep.subr.mxu0 %v539_v0 }
 0x10e   :  { %503 = vmatpush3.msra.mxu0 %v312_v57 }
 0x10f   :  { %v534_v43 = vpop.eup %533  ;;  %504 = vmatprep.subr.mxu0 %v539_v0 }
 0x110   :  { %v536_v44 = vpop.eup %535  ;;  %v199_v45 = vxor.u32 2147483648, %v534_v43  ;;  %505 = vmatpush3.msra.mxu0 %v311_v58 }
 0x111   :  { %v196_v46 = vxor.u32 2147483648, %v536_v44  ;;  %506 = vmatprep.subr.mxu0 %v539_v0 }
 0x112   :  { %v200_v47 = vsel %vm198_vm11, %v199_v45, %v536_v44  ;;  %507 = vmatpush3.msra.mxu0 %v310_v59 }
 0x113   :  { %v197_v48 = vsel %vm195_vm12, %v534_v43, %v196_v46  ;;  %508 = vmatprep.subr.mxu0 %v539_v0 }
 0x114   :  { %v201_v25 = vsel %vm194_vm13, %v197_v48, %v200_v47  ;;  %509 = vmatpush3.msra.mxu0 %v309_v60 }
 0x115   :  { %v202_v49 = vsel %vm191_vm14, nan, %v201_v25  ;;  %510 = vmatprep.subr.mxu0 %v539_v0 }
 0x116   :  { %484 = vmatmul.mubr.f32.vlgmr.msra.gmra.mxu1 %v202_v49  ;;  %511 = vmatpush3.msra.mxu0 %v308_v61 }
 0x117   :  { %512 = vmatprep.subr.mxu0 %v539_v0 }
 0x118   :  { %513 = vmatpush3.msra.mxu0 %v307_v62 }
 0x119   :  { %514 = vmatprep.subr.mxu0 %v539_v0 }
 0x11a   :  { %515 = vmatpush3.msra.mxu0 %v306_v63 }
 0x11b   :  { %516 = vmatprep.subr.mxu0 %v539_v0  ;;  %v409_v0 = vld [vmem:[%s755_s5] ss:$0 sm:$0xff] }
 0x11c   :  { %517 = vmatpush3.msra.mxu0 %v305_v1 }
 0x1d6   :  { %v292_v3 = vpop.f32.mrf.mxu1 }
 0x1d7   :  { %v293_v4 = vadd.f32 %v408_v2, %v292_v3 }
 0x1d8   :  { %v485_v5 = vpop.f32.mrf.mxu1 }
 0x1d9   :  { %v297_v6 = vmul.f32 0.044715, %v293_v4  ;;  %v296_v12 = vmul.f32 0.5, %v293_v4 }
 0x1db   :  { %v298_v7 = vmul.f32 %v297_v6, %v293_v4 }
 0x1dd   :  { %v299_v8 = vmul.f32 %v298_v7, %v293_v4 }
 0x1df   :  { %v300_v9 = vadd.f32 %v299_v8, %v293_v4 }
 0x1e1   :  { %v301_v10 = vmul.f32 0.7978846, %v300_v9 }
 0x1e3   :  { %537 = vtanh.f32 %v301_v10 }
 0x1f0   :  { %v538_v11 = vpop.eup %537 }
 0x1f1   :  { %v303_v13 = vadd.f32 1.0, %v538_v11 }
 0x1f3   :  { %v304_v14 = vmul.f32 %v303_v13, %v296_v12 }
 0x1f5   :  { %519 = vmatmul.mubr.f32.vlgmr.msra.gmra.mxu0 %v304_v14 }
 0x2b5   :  { %v394_v15 = vpop.f32.mrf.mxu0 }
 0x2b6   :  { %v395_v16 = vadd.f32 %v409_v0, %v394_v15 }
 0x2b7   :  { %v520_v17 = vpop.f32.mrf.mxu0 }
 0x2b8   :  { %398 = vst [vmem:[%s756_s6] sm:$0xff] %v395_v16 }

</bundles_post_ra>
